<compile_context>
chip_gen: v6e
topology: v6e:2x2x1
jax: 0.10.0
libtpu: 0.0.40
codegen_flags: <defaults>
</compile_context>

<pallas_src>
import functools

import jax
import jax.numpy as jnp
from jax.experimental import pallas as pl
from jax.experimental.pallas import tpu as pltpu


def _round_up(v, m):
    return ((v + m - 1) // m) * m


def _pick_divisor_tile(m, max_tile, mult):
    """Largest tile <= max_tile that divides m and is a multiple of mult
    (m must already be a multiple of mult)."""
    if m <= max_tile:
        return m
    best = mult
    t = mult
    while t <= max_tile:
        if m % t == 0:
            best = t
        t += mult
    return best


# -----------------------------------------------------------------------------
# Pallas kernel 1: tiled matmul + bias + optional ReLU  (cam-encode projection)
# -----------------------------------------------------------------------------
def _mm_bias_act_kernel(x_ref, w_ref, b_ref, o_ref, *, relu):
    acc = jnp.dot(x_ref[...], w_ref[...], preferred_element_type=jnp.float32)
    acc = acc + b_ref[...]
    if relu:
        acc = jnp.maximum(acc, 0.0)
    o_ref[...] = acc.astype(o_ref.dtype)


def pallas_matmul_bias_act(x, w_bf16, b_row, *, relu=False,
                           out_dtype=jnp.bfloat16, max_tile=1024):
    """x: (M, K) @ w_bf16: (K, N) + b_row: (1, N), optional ReLU.
    bf16 MXU operands, f32 accumulation."""
    M, K = x.shape
    Kw, N = w_bf16.shape
    assert K == Kw
    m_pad = _round_up(M, 16)                 # clean bf16 (16,128) packing
    if m_pad != M:
        x = jnp.pad(x, ((0, m_pad - M), (0, 0)))
    tile_m = _pick_divisor_tile(m_pad, max_tile, 16)

    out = pl.pallas_call(
        functools.partial(_mm_bias_act_kernel, relu=relu),
        out_shape=jax.ShapeDtypeStruct((m_pad, N), out_dtype),
        grid=(m_pad // tile_m,),
        in_specs=[
            pl.BlockSpec((tile_m, K), lambda i: (i, 0)),
            pl.BlockSpec((K, N), lambda i: (0, 0)),
            pl.BlockSpec((1, N), lambda i: (0, 0)),
        ],
        out_specs=pl.BlockSpec((tile_m, N), lambda i: (i, 0)),
        compiler_params=pltpu.CompilerParams(dimension_semantics=("parallel",)),
    )(x.astype(jnp.bfloat16), w_bf16, b_row)
    return out[:M]


# -----------------------------------------------------------------------------
# Pallas kernel 2: cross-camera fusion = pure sum over the camera axis.
# The wrapper already folded (valid_mask / num_valid_cams) into each sample, so
# no mask stream and no per-step divide are needed. Native (B, N, M, C) layout.
# -----------------------------------------------------------------------------
def _cam_fusion_kernel(w_ref, o_ref):
    # w_ref: (1, Ncam, tile, C) bf16, already weighted by valid / count.
    o_ref[...] = jnp.sum(w_ref[...].astype(jnp.float32), axis=1).astype(o_ref.dtype)


def pallas_cam_fusion(warped, *, max_tile=2048):
    """warped: (B, Ncam, M, C) bf16 (pre-weighted) -> (B, M, C) bf16 sum."""
    B, Ncam, M, C = warped.shape
    m_pad = _round_up(M, 16)
    if m_pad != M:
        warped = jnp.pad(warped, ((0, 0), (0, 0), (0, m_pad - M), (0, 0)))
    tile = _pick_divisor_tile(m_pad, max_tile, 16)

    out = pl.pallas_call(
        _cam_fusion_kernel,
        out_shape=jax.ShapeDtypeStruct((B, m_pad, C), jnp.bfloat16),
        grid=(B, m_pad // tile),
        in_specs=[pl.BlockSpec((1, Ncam, tile, C), lambda b, i: (b, 0, i, 0))],
        out_specs=pl.BlockSpec((1, tile, C), lambda b, i: (b, i, 0)),
        compiler_params=pltpu.CompilerParams(
            dimension_semantics=("parallel", "parallel")),
    )(warped)
    return out[:, :M]


# -----------------------------------------------------------------------------
# Pallas kernel 3: fused BevEncode.
# topdown stays in HBM; each grid step manually double-buffers a
# (tx+2, Y+2, C) row slab, builds a (tx*Y, 9*C) im2col slab in VMEM and does
# ONE K=9*C dot (3x3 conv) + ReLU + both 1x1 heads into a 128-lane bf16 slab.
# -----------------------------------------------------------------------------
def _bev_fused_kernel(td_hbm, w1_ref, b1_ref, wh_ref, bh_ref, o_ref,
                      buf, sem, *, tx, n_i, n_total):
    C = buf.shape[3]
    Y = o_ref.shape[2]
    rows = tx * Y

    b = pl.program_id(0)
    i = pl.program_id(1)
    step = b * n_i + i
    slot = step % 2

    def dma(bb, ii, s):
        return pltpu.make_async_copy(
            td_hbm.at[bb, pl.ds(ii * tx, tx + 2)], buf.at[s], sem.at[s])

    # prime the pipeline on the very first grid step
    @pl.when(step == 0)
    def _():
        dma(b, i, slot).start()

    # prefetch the next step's row slab into the other buffer
    @pl.when(step + 1 < n_total)
    def _():
        nxt = step + 1
        nxt_b = nxt // n_i
        nxt_i = nxt - nxt_b * n_i
        dma(nxt_b, nxt_i, 1 - slot).start()

    dma(b, i, slot).wait()

    # im2col: 9 shifted (tx, Y, C) taps -> one (rows, 9*C) slab, single dot.
    cur = buf[slot]                                  # (tx+2, Y+2, C) bf16
    taps = []
    for di in range(3):
        for dj in range(3):
            taps.append(cur[di:di + tx, dj:dj + Y, :].reshape(rows, C))
    patch = jnp.concatenate(taps, axis=-1)           # (rows, 9*C) bf16

    acc = jnp.dot(patch, w1_ref[...], preferred_element_type=jnp.float32)
    # note(v5e): the bf16 cast before the heads dot costs VALU there; it is
    # hidden on v6e/v7x and halves MXU operand bytes, so it stays.
    hidden = jnp.maximum(acc + b1_ref[...], 0.0).astype(jnp.bfloat16)
    out = jnp.dot(hidden, wh_ref[...], preferred_element_type=jnp.float32)
    out = out + bh_ref[...]
    o_ref[...] = out.reshape(o_ref.shape).astype(o_ref.dtype)


def _pick_tx(X, Y, C, H, NH, budget_bytes=8 * 1024 * 1024):
    """Largest tx dividing X whose per-step VMEM footprint fits the budget
    (aims for thousands of output rows per step instead of a fixed 256)."""
    per_row = (9 * C * 2          # bf16 im2col slab
               + H * 4 + NH * 4   # f32 conv / head accumulators
               + 2 * NH * 2       # double-buffered bf16 output block
               + 2 * C * 2)       # double-buffered bf16 input slab (approx)
    max_rows = max(Y, min(8192, budget_bytes // per_row))
    best = 1
    for t in range(1, X + 1):
        if X % t == 0 and t * Y <= max_rows:
            best = t
    return best


# -----------------------------------------------------------------------------
# IPMNet (JAX glue around the Pallas kernels)
# -----------------------------------------------------------------------------
class IPMNetPallas:
    def __init__(self, xbound, ybound, outC, camC=64, instance_seg=True,
                 embedded_dim=16, cam_encoding=True, bev_encoding=True,
                 z_roll_pitch=False, in_channels=3, bev_hidden=64, seed=42):
        self.xbound, self.ybound = xbound, ybound
        self.camC = camC
        self.outC = outC
        self.downsample = 16
        self.instance_seg = instance_seg
        self.embedded_dim = embedded_dim
        self.cam_encoding = cam_encoding
        self.bev_encoding = bev_encoding
        self.z_roll_pitch = z_roll_pitch
        self.in_channels = in_channels
        self.bev_hidden = bev_hidden

        self.X = int(round((xbound[1] - xbound[0]) / xbound[2]))
        self.Y = int(round((ybound[1] - ybound[0]) / ybound[2]))

        # deterministic synthetic parameters
        k = jax.random.PRNGKey(seed)
        k1, k2, k3, k4 = jax.random.split(k, 4)
        ds = self.downsample

        # CamEncode stand-in weights, pre-reshaped and pre-cast to bf16.
        self.W_cam = (0.02 * jax.random.normal(
            k1, (in_channels * ds * ds, camC), jnp.float32)).astype(jnp.bfloat16)
        self.b_cam = jnp.zeros((1, camC), jnp.float32)

        # 3x3 conv weight stored as the im2col matrix (9*camC, bev_hidden), bf16
        # (tap-major layout matches the in-kernel concatenation order).
        self.W_bev1 = (0.02 * jax.random.normal(
            k2, (9, camC, bev_hidden), jnp.float32)
                       ).reshape(9 * camC, bev_hidden).astype(jnp.bfloat16)
        self.b_bev1 = jnp.zeros((1, bev_hidden), jnp.float32)

        # fused heads: (bev_hidden, outC+embedded_dim) zero-padded to 128 lanes.
        W_seg = 0.02 * jax.random.normal(k3, (bev_hidden, outC), jnp.float32)
        W_emb = 0.02 * jax.random.normal(
            k4, (bev_hidden, embedded_dim), jnp.float32)
        self.head_dim = outC + embedded_dim
        self.NH = max(128, _round_up(self.head_dim, 128))
        head_w = jnp.concatenate([W_seg, W_emb], axis=1)
        self.W_heads = jnp.pad(
            head_w, ((0, 0), (0, self.NH - self.head_dim))).astype(jnp.bfloat16)
        self.b_heads = jnp.zeros((1, self.NH), jnp.float32)

    # -- CamEncode stand-in: 16x16 / stride-16 patch projection + ReLU --------
    def get_cam_feats(self, x):
        """x: (B, N, C, imH, imW) -> (B, N, fH, fW, camC) channels-last bf16."""
        B, N, C, imH, imW = x.shape
        ds = self.downsample
        fH, fW = imH // ds, imW // ds
        xr = x.reshape(B * N, C, fH, ds, fW, ds)
        xr = jnp.transpose(xr, (0, 2, 4, 1, 3, 5))        # (BN, fH, fW, C, ds, ds)
        xr = xr.reshape(B * N * fH * fW, C * ds * ds)
        feats = pallas_matmul_bias_act(
            xr, self.W_cam, self.b_cam, relu=True, out_dtype=jnp.bfloat16)
        return feats.reshape(B, N, fH, fW, self.camC)

    # -- exact port of get_Ks_RTs_and_post_RTs --------------------------------
    def get_Ks_RTs_and_post_RTs(self, intrins, rots, trans, post_rots, post_trans):
        B, N = intrins.shape[:2]
        eye = jnp.tile(jnp.eye(4, dtype=jnp.float32), (B, N, 1, 1))
        Ks = eye.at[:, :, :3, :3].set(intrins)
        Rs = eye.at[:, :, :3, :3].set(jnp.swapaxes(rots, -1, -2))
        Ts = eye.at[:, :, :3, 3].set(-trans)
        RTs = Rs @ Ts
        post_RTs = eye.at[:, :, :3, :3].set(post_rots)
        post_RTs = post_RTs.at[:, :, :3, 3].set(post_trans)
        if self.cam_encoding:
            scale = jnp.array(
                [[1.0 / self.downsample, 0, 0, 0],
                 [0, 1.0 / self.downsample, 0, 0],
                 [0, 0, 1, 0],
                 [0, 0, 0, 1]], jnp.float32)
            post_RTs = scale @ post_RTs
        return Ks, RTs, post_RTs

    # -- IPM: project BEV plane (z=0) into each camera, bilinear sample, fuse -
    def ipm(self, feats, Ks, RTs, translation, yaw_pitch_roll, post_RTs):
        """feats: (B, N, fH, fW, camC) bf16 -> topdown (B, X, Y, camC) bf16."""
        B, N, fH, fW, C = feats.shape
        X, Y = self.X, self.Y
        M = X * Y

        xs = self.xbound[0] + self.xbound[2] * (jnp.arange(X, dtype=jnp.float32) + 0.5)
        ys = self.ybound[0] + self.ybound[2] * (jnp.arange(Y, dtype=jnp.float32) + 0.5)
        gx, gy = jnp.meshgrid(xs, ys, indexing="ij")
        pts = jnp.stack(
            [gx.ravel(), gy.ravel(),
             jnp.zeros((M,), jnp.float32), jnp.ones((M,), jnp.float32)], axis=0)

        P = post_RTs @ Ks @ RTs                             # (B, N, 4, 4)
        cam = jnp.einsum("bnij,jm->bnim", P, pts)           # (B, N, 4, M)
        z = cam[:, :, 2, :]
        zc = jnp.where(jnp.abs(z) < 1e-6, 1e-6, z)
        u = cam[:, :, 0, :] / zc
        v = cam[:, :, 1, :] / zc
        valid = ((z > 0.1) & (u >= 0) & (u <= fW - 1) &
                 (v >= 0) & (v <= fH - 1)).astype(jnp.float32)   # (B, N, M)

        u = jnp.clip(u, 0.0, fW - 1.0)
        v = jnp.clip(v, 0.0, fH - 1.0)
        u0 = jnp.clip(jnp.floor(u), 0, fW - 2).astype(jnp.int32)
        v0 = jnp.clip(jnp.floor(v), 0, fH - 2).astype(jnp.int32)
        du = u - u0.astype(jnp.float32)
        dv = v - v0.astype(jnp.float32)

        feat_flat = feats.reshape(B, N, fH * fW, C)          # bf16 -> half gather bytes

        def gval(vy, ux):
            idx = vy * fW + ux                               # (B, N, M)
            return jnp.take_along_axis(feat_flat, idx[..., None], axis=2)

        s00 = gval(v0, u0)
        s01 = gval(v0, u0 + 1)
        s10 = gval(v0 + 1, u0)
        s11 = gval(v0 + 1, u0 + 1)
        w00 = ((1 - du) * (1 - dv))[..., None]
        w01 = (du * (1 - dv))[..., None]
        w10 = ((1 - du) * dv)[..., None]
        w11 = (du * dv)[..., None]
        samp = w00 * s00 + w01 * s01 + w10 * s10 + w11 * s11   # (B, N, M, C) f32

        # fold the validity mask AND exact 1/num_valid_cams into one per-sample
        # weight so the Pallas fusion kernel is a pure sum over the camera axis
        # (no lane-padded (.,1) mask stream, no in-kernel divide).
        count = jnp.sum(valid, axis=1)                          # (B, M)
        weight = valid * (1.0 / jnp.maximum(count, 1.0))[:, None, :]
        warped = (samp * weight[..., None]).astype(jnp.bfloat16)  # (B, N, M, C)

        fused = pallas_cam_fusion(warped)                       # (B, M, C) bf16
        return fused.reshape(B, X, Y, C)

    # -- BevEncode stand-in: fused 3x3-conv + ReLU + both 1x1 heads -----------
    def bevencode(self, topdown):
        """topdown: (B, X, Y, camC) bf16 -> (seg (B,outC,X,Y), emb (B,emb,X,Y))."""
        B, X, Y, C = topdown.shape
        H = self.bev_hidden
        NH = self.NH
        tx = _pick_tx(X, Y, C, H, NH)
        n_i = X // tx

        padded = jnp.pad(topdown, ((0, 0), (1, 1), (1, 1), (0, 0)))   # bf16

        out = pl.pallas_call(
            functools.partial(_bev_fused_kernel, tx=tx, n_i=n_i,
                              n_total=B * n_i),
            out_shape=jax.ShapeDtypeStruct((B, X, Y, NH), jnp.bfloat16),
            grid=(B, n_i),
            in_specs=[
                pl.BlockSpec(memory_space=pl.ANY),      # topdown stays in HBM
                pl.BlockSpec((9 * C, H), lambda b, i: (0, 0)),
                pl.BlockSpec((1, H), lambda b, i: (0, 0)),
                pl.BlockSpec((H, NH), lambda b, i: (0, 0)),
                pl.BlockSpec((1, NH), lambda b, i: (0, 0)),
            ],
            out_specs=pl.BlockSpec((1, tx, Y, NH), lambda b, i: (b, i, 0, 0)),
            scratch_shapes=[
                pltpu.VMEM((2, tx + 2, Y + 2, C), jnp.bfloat16),
                pltpu.SemaphoreType.DMA((2,)),
            ],
            compiler_params=pltpu.CompilerParams(
                # sequential semantics: steps hand prefetched row slabs forward
                dimension_semantics=("arbitrary", "arbitrary"),
                vmem_limit_bytes=32 * 1024 * 1024),
        )(padded, self.W_bev1, self.b_bev1, self.W_heads, self.b_heads)

        seg = jnp.transpose(out[..., :self.outC], (0, 3, 1, 2)).astype(jnp.float32)
        if not self.instance_seg:
            return seg
        emb = jnp.transpose(
            out[..., self.outC:self.head_dim], (0, 3, 1, 2)).astype(jnp.float32)
        return seg, emb

    # -- forward ---------------------------------------------------------------
    def __call__(self, points, points_mask, x, rots, trans, intrins,
                 post_rots, post_trans, translation, yaw_pitch_roll):
        if self.cam_encoding:
            x = self.get_cam_feats(x)
        Ks, RTs, post_RTs = self.get_Ks_RTs_and_post_RTs(
            intrins, rots, trans, post_rots, post_trans)
        topdown = self.ipm(x, Ks, RTs, translation, yaw_pitch_roll, post_RTs)
        if self.bev_encoding:
            return self.bevencode(topdown)
        return jnp.transpose(topdown, (0, 3, 1, 2)).astype(jnp.float32)


# -----------------------------------------------------------------------------
# Example run
# -----------------------------------------------------------------------------
def _make_camera_rigs(B, N):
    """Simple ring of N forward-tilted cameras around ego (cam->ego rotations)."""
    yaws = jnp.arange(N, dtype=jnp.float32) * (2.0 * jnp.pi / N)
    c, s = jnp.cos(yaws), jnp.sin(yaws)
    zeros = jnp.zeros_like(c)
    ones = jnp.ones_like(c)
    # columns = camera x (right), y (down), z (forward) expressed in ego frame
    R = jnp.stack([
        jnp.stack([s, zeros, c], axis=-1),
        jnp.stack([-c, zeros, s], axis=-1),
        jnp.stack([zeros, -ones, zeros], axis=-1),
    ], axis=-2)                                               # (N, 3, 3)
    rots = jnp.broadcast_to(R, (B, N, 3, 3))
    trans = jnp.broadcast_to(
        jnp.stack([0.5 * c, 0.5 * s, 1.5 * ones], axis=-1), (B, N, 3))
    return rots.astype(jnp.float32), trans.astype(jnp.float32)


if __name__ == "__main__":
    B, N, Cin, imH, imW = 2, 6, 3, 32, 32
    xbound = (-8.0, 8.0, 1.0)   # -> X = 16 BEV cells
    ybound = (-8.0, 8.0, 1.0)   # -> Y = 16 BEV cells
    outC, camC, embedded_dim = 4, 64, 16

    net = IPMNetPallas(xbound, ybound, outC, camC=camC, instance_seg=True,
                       embedded_dim=embedded_dim, cam_encoding=True,
                       bev_encoding=True, z_roll_pitch=False, in_channels=Cin)

    key = jax.random.PRNGKey(0)
    kx, = jax.random.split(key, 1)
    x = jax.random.normal(kx, (B, N, Cin, imH, imW), jnp.float32)

    rots, trans = _make_camera_rigs(B, N)
    intrins = jnp.broadcast_to(
        jnp.array([[20.0, 0.0, 16.0],
                   [0.0, 20.0, 16.0],
                   [0.0, 0.0, 1.0]], jnp.float32), (B, N, 3, 3))
    post_rots = jnp.broadcast_to(jnp.eye(3, dtype=jnp.float32), (B, N, 3, 3))
    post_trans = jnp.zeros((B, N, 3), jnp.float32)
    translation = jnp.zeros((B, 3), jnp.float32)
    yaw_pitch_roll = jnp.zeros((B, 3), jnp.float32)
    points = jnp.zeros((B, 8, 3), jnp.float32)        # unused by forward
    points_mask = jnp.zeros((B, 8), jnp.float32)      # unused by forward

    seg, emb = net(points, points_mask, x, rots, trans, intrins,
                   post_rots, post_trans, translation, yaw_pitch_roll)
    jax.block_until_ready(seg)
    jax.block_until_ready(emb)
    assert seg.shape == (B, outC, 16, 16)
    assert emb.shape == (B, embedded_dim, 16, 16)
    assert bool(jnp.all(jnp.isfinite(seg))) and bool(jnp.all(jnp.isfinite(emb)))
    print("KERNEL_OK")
</pallas_src>

<mosaic_0001>
module attributes {stable_mosaic.version = 11 : i64} {
  func.func @_mm_bias_act_kernel(%arg0: i32, %arg1: memref<48x768xbf16, #tpu.memory_space<vmem>>, %arg2: memref<768x64xbf16, #tpu.memory_space<vmem>>, %arg3: memref<1x64xf32, #tpu.memory_space<vmem>>, %arg4: memref<48x64xbf16, #tpu.memory_space<vmem>>) attributes {dimension_semantics = [#tpu.dimension_semantics<parallel>], iteration_bounds = array<i64: 1>, scalar_prefetch = 0 : i64, scratch_operands = 0 : i64, tpu.core_type = #tpu.core_type<tc>, window_params = [{transform_indices = @transform_0, window_bounds = array<i64: 48, 768>}, {pipeline_mode = #tpu.pipeline_mode<synchronous>, transform_indices = @transform_1, window_bounds = array<i64: 768, 64>}, {pipeline_mode = #tpu.pipeline_mode<synchronous>, transform_indices = @transform_2, window_bounds = array<i64: 1, 64>}, {transform_indices = @transform_3, window_bounds = array<i64: 48, 64>}]} {
    %c0 = arith.constant 0 : index
    %c0_0 = arith.constant 0 : index
    %0 = vector.load %arg1[%c0, %c0_0] : memref<48x768xbf16, #tpu.memory_space<vmem>>, vector<48x768xbf16>
    %c0_1 = arith.constant 0 : index
    %c0_2 = arith.constant 0 : index
    %1 = vector.load %arg2[%c0_1, %c0_2] : memref<768x64xbf16, #tpu.memory_space<vmem>>, vector<768x64xbf16>
    %cst = arith.constant dense<0.000000e+00> : vector<48x64xf32>
    %2 = tpu.matmul %0, %1, %cst {dimension_numbers = #tpu.dot_dimension_numbers<[1], [0], [0], [1], [0, 0, 1, 1], [], []>} : vector<48x768xbf16>, vector<768x64xbf16>, vector<48x64xf32> -> vector<48x64xf32>
    %c0_3 = arith.constant 0 : index
    %c0_4 = arith.constant 0 : index
    %3 = vector.load %arg3[%c0_3, %c0_4] : memref<1x64xf32, #tpu.memory_space<vmem>>, vector<1x64xf32>
    %4 = vector.broadcast %3 : vector<1x64xf32> to vector<48x64xf32>
    %5 = arith.addf %2, %4 : vector<48x64xf32>
    %cst_5 = arith.constant 0.000000e+00 : f32
    %6 = vector.broadcast %cst_5 : f32 to vector<48x64xf32>
    %7 = arith.maximumf %5, %6 : vector<48x64xf32>
    %8 = arith.truncf %7 : vector<48x64xf32> to vector<48x64xbf16>
    %c0_6 = arith.constant 0 : index
    %c0_7 = arith.constant 0 : index
    %9 = vector.load %arg4[%c0_6, %c0_7] : memref<48x64xbf16, #tpu.memory_space<vmem>>, vector<48x64xbf16>
    tpu.vector_store %arg4[%c0_6, %c0_7], %8 {strides = array<i32>} : memref<48x64xbf16, #tpu.memory_space<vmem>>, vector<48x64xbf16>,
    return
  }
  func.func @transform_0(%arg0: i32) -> (i32, i32) {
    %c0_i32 = arith.constant 0 : i32
    %c0_i32_0 = arith.constant 0 : i32
    return %arg0, %c0_i32 : i32, i32
  }
  func.func @transform_1(%arg0: i32) -> (i32, i32) {
    %c0_i32 = arith.constant 0 : i32
    %c0_i32_0 = arith.constant 0 : i32
    %c0_i32_1 = arith.constant 0 : i32
    return %c0_i32, %c0_i32_0 : i32, i32
  }
  func.func @transform_2(%arg0: i32) -> (i32, i32) {
    %c0_i32 = arith.constant 0 : i32
    %c0_i32_0 = arith.constant 0 : i32
    %c0_i32_1 = arith.constant 0 : i32
    return %c0_i32, %c0_i32_0 : i32, i32
  }
  func.func @transform_3(%arg0: i32) -> (i32, i32) {
    %c0_i32 = arith.constant 0 : i32
    %c0_i32_0 = arith.constant 0 : i32
    return %arg0, %c0_i32 : i32, i32
  }
}

</mosaic_0001>

<bundles_post_ra>
// kernel: tpu_custom_call.1
= control target key start
LH: loop header
LB: loop body
LE: loop exit
PB: predicated region body
PF: predicated region fallthrough
CT: control target
= control target key end

     0   :  { %s1269_s0 = inlined_call_operand.vmem [shape: bf16[48,768], index: 0, kind: input, shape index: {}]   ;;  %s1270_s1 = inlined_call_operand.vmem [shape: bf16[768,64], index: 1, kind: input, shape index: {}]   ;;  %s1271_s2 = inlined_call_operand.vmem [shape: f32[1,64], index: 2, kind: input, shape index: {}]   ;;  %s1272_s3 = inlined_call_operand.hbm [shape: bf16[48,64], index: 3, kind: output, shape index: {}]  }
   0x1   :  { %v939_v0 = vld [vmem:[%s1270_s1 + $0x78] sm:$0xff]   ;;  %v943_v4 = vld [vmem:[%s1270_s1 + $0x70] sm:$0xff]   ;;  %v947_v8 = vld [vmem:[%s1270_s1 + $0x68] sm:$0xff]  }
   0x2   :  { %v940_v1 = vld [vmem:[%s1270_s1 + $0xf8] sm:$0xff]   ;;  %818 = vmatprep.subr.bf16.mxu0 %v939_v0  ;;  %v944_v5 = vld [vmem:[%s1270_s1 + $0xf0] sm:$0xff]   ;;  %v948_v9 = vld [vmem:[%s1270_s1 + $0xe8] sm:$0xff]  }
   0x3   :  { %v941_v2 = vld [vmem:[%s1270_s1 + $0x38] sm:$0xff]   ;;  %852 = vmatprep.subr.bf16.mxu1 %v940_v1  ;;  %v945_v6 = vld [vmem:[%s1270_s1 + $0x30] sm:$0xff]   ;;  %v949_v10 = vld [vmem:[%s1270_s1 + $0x28] sm:$0xff]  }
   0x4   :  { %v942_v3 = vld [vmem:[%s1270_s1 + $0xb8] sm:$0xff]   ;;  %819 = vmatpush3.bf16.msra.mxu0 %v941_v2  ;;  %v946_v7 = vld [vmem:[%s1270_s1 + $0xb0] sm:$0xff]   ;;  %v950_v11 = vld [vmem:[%s1270_s1 + $0xa8] sm:$0xff]  }
   0x5   :  { %853 = vmatpush3.bf16.msra.mxu1 %v942_v3  ;;  %820 = vmatprep.subr.bf16.mxu0 %v943_v4  ;;  %v951_v12 = vld [vmem:[%s1270_s1 + $0x60] sm:$0xff]   ;;  %v955_v16 = vld [vmem:[%s1270_s1 + $0x58] sm:$0xff]   ;;  %v959_v20 = vld [vmem:[%s1270_s1 + $0x50] sm:$0xff]  }
   0x6   :  { %854 = vmatprep.subr.bf16.mxu1 %v944_v5  ;;  %v952_v13 = vld [vmem:[%s1270_s1 + $0xe0] sm:$0xff]   ;;  %v956_v17 = vld [vmem:[%s1270_s1 + $0xd8] sm:$0xff]   ;;  %v960_v21 = vld [vmem:[%s1270_s1 + $0xd0] sm:$0xff]  }
   0x7   :  { %v953_v14 = vld [vmem:[%s1270_s1 + $0x20] sm:$0xff]   ;;  %v957_v18 = vld [vmem:[%s1270_s1 + $0x18] sm:$0xff]   ;;  %v961_v22 = vld [vmem:[%s1270_s1 + $0x10] sm:$0xff]  }
   0x8   :  { %821 = vmatpush3.bf16.msra.mxu0 %v945_v6  ;;  %v954_v15 = vld [vmem:[%s1270_s1 + $0xa0] sm:$0xff]   ;;  %v958_v19 = vld [vmem:[%s1270_s1 + $0x98] sm:$0xff]   ;;  %v962_v23 = vld [vmem:[%s1270_s1 + $0x90] sm:$0xff]  }
   0x9   :  { %855 = vmatpush3.bf16.msra.mxu1 %v946_v7  ;;  %822 = vmatprep.subr.bf16.mxu0 %v947_v8  ;;  %v963_v24 = vld [vmem:[%s1270_s1 + $0x48] sm:$0xff]   ;;  %v967_v28 = vld [vmem:[%s1270_s1 + $0x40] sm:$0xff]   ;;  %v977_v36 = vld [vmem:[%s1270_s1 + $0x178] sm:$0xff]  }
   0xa   :  { %856 = vmatprep.subr.bf16.mxu1 %v948_v9  ;;  %v964_v25 = vld [vmem:[%s1270_s1 + $0xc8] sm:$0xff]   ;;  %v968_v29 = vld [vmem:[%s1270_s1 + $0xc0] sm:$0xff]   ;;  %v978_v37 = vld [vmem:[%s1270_s1 + $0x138] sm:$0xff]  }
   0xb   :  { %v965_v26 = vld [vmem:[%s1270_s1 + $0x8] sm:$0xff]   ;;  %v969_v30 = vld [vmem:[%s1270_s1] sm:$0xff]   ;;  %v979_v38 = vld [vmem:[%s1270_s1 + $0x170] sm:$0xff]  }
   0xc   :  { %823 = vmatpush3.bf16.msra.mxu0 %v949_v10  ;;  %v966_v27 = vld [vmem:[%s1270_s1 + $0x88] sm:$0xff]   ;;  %v970_v31 = vld [vmem:[%s1270_s1 + $0x80] sm:$0xff]   ;;  %v980_v39 = vld [vmem:[%s1270_s1 + $0x130] sm:$0xff]  }
   0xd   :  { %857 = vmatpush3.bf16.msra.mxu1 %v950_v11  ;;  %824 = vmatprep.subr.bf16.mxu0 %v951_v12  ;;  %v971_v32 = vld [vmem:[%s1269_s0] ss:$24 sps:$4 sm:$0xff]   ;;  %v973_v33 = vld [vmem:[%s1269_s0 + $0x4] ss:$24 sps:$4 sm:$0xff]   ;;  %v981_v40 = vld [vmem:[%s1269_s0 + $0x34] ss:$24 sps:$4 sm:$0xff]  }
   0xe   :  { %858 = vmatprep.subr.bf16.mxu1 %v952_v13  ;;  %v974_v34 = vld [vmem:[%s1269_s0 + $0x8] ss:$24 sps:$4 sm:$0xff]   ;;  %v976_v35 = vld [vmem:[%s1269_s0 + $0xc] ss:$24 sps:$4 sm:$0xff]   ;;  %547 = vmatprep.mubr.bf16.mxu0 %v973_v33  ;;  %v985_v43 = vld [vmem:[%s1269_s0 + $0x3c] ss:$24 sps:$4 sm:$0xff]  }
   0xf   :  { %604 = vmatprep.mubr.bf16.mxu1 %v976_v35  ;;  %v983_v41 = vld [vmem:[%s1269_s0 + $0x30] ss:$24 sps:$4 sm:$0xff]   ;;  %v989_v46 = vld [vmem:[%s1270_s1 + $0x160] sm:$0xff]   ;;  %v994_v50 = vld [vmem:[%s1270_s1 + $0x158] sm:$0xff]  }
  0x10   :  { %825 = vmatpush3.bf16.msra.mxu0 %v953_v14  ;;  %v984_v42 = vld [vmem:[%s1270_s1 + $0x168] sm:$0xff]   ;;  %v988_v45 = vld [vmem:[%s1269_s0 + $0x38] ss:$24 sps:$4 sm:$0xff]   ;;  %v990_v47 = vld [vmem:[%s1270_s1 + $0x120] sm:$0xff]  }
  0x11   :  { %859 = vmatpush3.bf16.msra.mxu1 %v954_v15  ;;  %826 = vmatprep.subr.bf16.mxu0 %v955_v16  ;;  %v987_v44 = vld [vmem:[%s1270_s1 + $0x128] sm:$0xff]   ;;  %v991_v48 = vld [vmem:[%s1269_s0 + $0x64] ss:$24 sps:$4 sm:$0xff]   ;;  %v993_v49 = vld [vmem:[%s1269_s0 + $0x60] ss:$24 sps:$4 sm:$0xff]  }
  0x12   :  { %860 = vmatprep.subr.bf16.mxu1 %v956_v17  ;;  %v995_v51 = vld [vmem:[%s1269_s0 + $0x6c] ss:$24 sps:$4 sm:$0xff]   ;;  %v997_v52 = vld [vmem:[%s1270_s1 + $0x118] sm:$0xff]   ;;  %v998_v53 = vld [vmem:[%s1269_s0 + $0x68] ss:$24 sps:$4 sm:$0xff]  }
  0x13   :  { %v999_v54 = vld [vmem:[%s1270_s1 + $0x150] sm:$0xff]   ;;  %v1001_v56 = vld [vmem:[%s1270_s1 + $0x148] sm:$0xff]   ;;  %v1010_v59 = vld [vmem:[%s1269_s0 + $0x44] ss:$24 sps:$4 sm:$0xff]  }
  0x14   :  { %827 = vmatpush3.bf16.msra.mxu0 %v957_v18  ;;  %v1000_v55 = vld [vmem:[%s1270_s1 + $0x110] sm:$0xff]   ;;  %v1002_v58 = vld [vmem:[%s1270_s1 + $0x108] sm:$0xff]   ;;  %v1003_v60 = vld [vmem:[%s1270_s1 + $0x140] sm:$0xff]  }
  0x15   :  { %861 = vmatpush3.bf16.msra.mxu1 %v958_v19  ;;  %828 = vmatprep.subr.bf16.mxu0 %v959_v20  ;;  %v1007_v57 = vld [vmem:[%s1269_s0 + $0x14] ss:$24 sps:$4 sm:$0xff]  }
  0x16   :  { %862 = vmatprep.subr.bf16.mxu1 %v960_v21 }
  0x18   :  { %829 = vmatpush3.bf16.msra.mxu0 %v961_v22 }
  0x19   :  { %863 = vmatpush3.bf16.msra.mxu1 %v962_v23  ;;  %830 = vmatprep.subr.bf16.mxu0 %v963_v24 }
  0x1a   :  { %864 = vmatprep.subr.bf16.mxu1 %v964_v25 }
  0x1c   :  { %831 = vmatpush3.bf16.msra.mxu0 %v965_v26 }
  0x1d   :  { %865 = vmatpush3.bf16.msra.mxu1 %v966_v27  ;;  %832 = vmatprep.subr.bf16.mxu0 %v967_v28 }
  0x1e   :  { %866 = vmatprep.subr.bf16.mxu1 %v968_v29 }
  0x20   :  { %833 = vmatpush3.bf16.msra.mxu0 %v969_v30 }
  0x21   :  { %867 = vmatpush3.bf16.msra.mxu1 %v970_v31  ;;  %886 = vmatprep.subr.bf16.mxu0 %v977_v36 }
  0x22   :  { %920 = vmatprep.subr.bf16.mxu1 %v977_v36 }
  0x23   :  { %548 = vmatmul.mubr.bf16.vlgmr.msra.gmra.mxu0 %v971_v32 }
  0x24   :  { %605 = vmatmul.mubr.bf16.vlgmr.msra.gmra.mxu1 %v974_v34  ;;  %887 = vmatpush3.bf16.msra.mxu0 %v978_v37 }
  0x25   :  { %928 = vmatpush3.bf16.msra.mxu1 %v978_v37  ;;  %888 = vmatprep.subr.bf16.mxu0 %v979_v38 }
  0x26   :  { %921 = vmatprep.subr.bf16.mxu1 %v979_v38  ;;  %555 = vmatprep.mubr.bf16.mxu0 %v981_v40 }
  0x27   :  { %612 = vmatprep.mubr.bf16.mxu1 %v985_v43 }
  0x28   :  { %889 = vmatpush3.bf16.msra.mxu0 %v980_v39 }
  0x29   :  { %929 = vmatpush3.bf16.msra.mxu1 %v980_v39  ;;  %890 = vmatprep.subr.bf16.mxu0 %v984_v42 }
  0x2a   :  { %922 = vmatprep.subr.bf16.mxu1 %v984_v42 }
  0x2b   :  { %556 = vmatmul.mubr.bf16.gmra.mxu0 %v983_v41 }
  0x2c   :  { %891 = vmatpush3.bf16.msra.mxu0 %v987_v44  ;;  %613 = vmatmul.mubr.bf16.gmra.mxu1 %v988_v45 }
  0x2d   :  { %930 = vmatpush3.bf16.msra.mxu1 %v987_v44  ;;  %892 = vmatprep.subr.bf16.mxu0 %v989_v46 }
  0x2e   :  { %923 = vmatprep.subr.bf16.mxu1 %v989_v46  ;;  %563 = vmatprep.mubr.bf16.mxu0 %v991_v48 }
  0x2f   :  { %620 = vmatprep.mubr.bf16.mxu1 %v995_v51 }
  0x30   :  { %893 = vmatpush3.bf16.msra.mxu0 %v990_v47 }
  0x31   :  { %931 = vmatpush3.bf16.msra.mxu1 %v990_v47  ;;  %894 = vmatprep.subr.bf16.mxu0 %v994_v50 }
  0x32   :  { %924 = vmatprep.subr.bf16.mxu1 %v994_v50 }
  0x33   :  { %564 = vmatmul.mubr.bf16.gmra.mxu0 %v993_v49 }
  0x34   :  { %895 = vmatpush3.bf16.msra.mxu0 %v997_v52  ;;  %621 = vmatmul.mubr.bf16.gmra.mxu1 %v998_v53 }
  0x35   :  { %932 = vmatpush3.bf16.msra.mxu1 %v997_v52  ;;  %896 = vmatprep.subr.bf16.mxu0 %v999_v54 }
  0x36   :  { %925 = vmatprep.subr.bf16.mxu1 %v999_v54  ;;  %661 = vmatprep.mubr.bf16.mxu0 %v1007_v57 }
  0x38   :  { %897 = vmatpush3.bf16.msra.mxu0 %v1000_v55 }
  0x39   :  { %933 = vmatpush3.bf16.msra.mxu1 %v1000_v55  ;;  %898 = vmatprep.subr.bf16.mxu0 %v1001_v56 }
  0x3a   :  { %926 = vmatprep.subr.bf16.mxu1 %v1001_v56 }
  0x3b   :  { %8 = vsyncpa [#allocation3], 0  ;;  %669 = vmatprep.mubr.bf16.mxu1 %v1010_v59  ;;  %v1004_v61 = vld [vmem:[%s1270_s1 + $0x100] sm:$0xff]   ;;  %v1005_v62 = vld [vmem:[%s1269_s0 + $0x10] ss:$24 sps:$4 sm:$0xff]   ;;  %vm716_vm0 = vcmask 519168  }
  0x3c   :  { %899 = vmatpush3.bf16.msra.mxu0 %v1002_v58  ;;  %v1008_v63 = vld [vmem:[%s1269_s0 + $0x40] ss:$24 sps:$4 sm:$0xff]   ;;  %v1011_v0 = vld [vmem:[%s1269_s0 + $0x74] ss:$24 sps:$4 sm:$0xff]   ;;  %v1013_v1 = vld [vmem:[%s1269_s0 + $0x70] ss:$24 sps:$4 sm:$0xff]  }
  0x3d   :  { %934 = vmatpush3.bf16.msra.mxu1 %v1002_v58  ;;  %900 = vmatprep.subr.bf16.mxu0 %v1003_v60  ;;  %v739_v25 = vld [vmem:[%s1271_s2] ss:$0 sm:$0xff]  ;;  %s1036_s2 = smov [#allocation2]  }
  0x3e   :  { %927 = vmatprep.subr.bf16.mxu1 %v1003_v60  ;;  %s728_s9 = sshll.u32 %s1036_s2, 4  ;;  %s729_s9 = int_to_ptr.vmem [resolvable:$true] %s728_s9 }
  0x3f   :  { %s1014_s10 = scalar_lea.vmem %s729_s9, 384  ;;  %p1019_p1 = scmp.lt.s32.totalorder %s729_s9, %s729_s9 }
  0x40   :  { %901 = vmatpush3.bf16.msra.mxu0 %v1004_v61  ;;  %p1015_p0 = scmp.ne.s32.totalorder %s729_s9, %s1014_s10  ;;  %p1020_p2 = scmp.lt.s32.totalorder %s1014_s10, %s1014_s10 }
  0x41   :  { %935 = vmatpush3.bf16.msra.mxu1 %v1004_v61 }
  0x42   :  { %p1021_p3 = por %p1020_p2, %p1019_p1 }
  0x43   :  { %662 = vmatmul.mubr.bf16.vlgmr.msra.gmra.mxu0 %v1005_v62 }
  0x44   :  { %670 = vmatmul.mubr.bf16.vlgmr.msra.gmra.mxu1 %v1008_v63  ;;  %p1022_p4 = pnand %p1021_p3, %p1015_p0 }
  0x45   :  { %677 = vmatprep.mubr.bf16.mxu1 %v1011_v0 }
  0x4c   :  { %678 = vmatmul.mubr.bf16.gmra.mxu1 %v1013_v1 }
  0xe3   :  { %v834_v2 = vpop.f32.mrf.mxu0 }
  0xe4   :  { %v868_v3 = vpop.f32.mrf.mxu1 }
  0xe5   :  { %v835_v4 = vpop.f32.mrf.mxu0 }
  0xe6   :  { %v869_v5 = vpop.f32.mrf.mxu1  ;;  %v836_v23 = vadd.f32 %v835_v4, %v834_v2 }
  0xe7   :  { %v837_v6 = vpop.f32.mrf.mxu0  ;;  %v870_v35 = vadd.f32 %v869_v5, %v868_v3 }
  0xe8   :  { %v871_v7 = vpop.f32.mrf.mxu1  ;;  %v550_v29 = vadd.f32 %v836_v23, %v739_v25 }
  0xe9   :  { %v838_v8 = vpop.f32.mrf.mxu0 }
  0xea   :  { %v872_v9 = vpop.f32.mrf.mxu1  ;;  %v839_v27 = vadd.f32 %v838_v8, %v837_v6  ;;  %v607_v39 = vadd.f32 %v870_v35, %v550_v29 }
  0xeb   :  { %v840_v10 = vpop.f32.mrf.mxu0  ;;  %v873_v40 = vadd.f32 %v872_v9, %v871_v7 }
  0xec   :  { %v874_v12 = vpop.f32.mrf.mxu1  ;;  %v553_v37 = vadd.f32 %v839_v27, %v739_v25 }
  0xed   :  { %v841_v11 = vpop.f32.mrf.mxu0 }
  0xee   :  { %v875_v14 = vpop.f32.mrf.mxu1  ;;  %v842_v26 = vadd.f32 %v841_v11, %v840_v10  ;;  %v610_v51 = vadd.f32 %v873_v40, %v553_v37 }
  0xef   :  { %v843_v13 = vpop.f32.mrf.mxu0  ;;  %v876_v32 = vadd.f32 %v875_v14, %v874_v12 }
  0xf0   :  { %v877_v15 = vpop.f32.mrf.mxu1  ;;  %v558_v31 = vadd.f32 %v842_v26, %v739_v25 }
  0xf1   :  { %v844_v16 = vpop.f32.mrf.mxu0 }
  0xf2   :  { %v878_v17 = vpop.f32.mrf.mxu1  ;;  %v845_v33 = vadd.f32 %v844_v16, %v843_v13  ;;  %v615_v44 = vadd.f32 %v876_v32, %v558_v31 }
  0xf3   :  { %v846_v18 = vpop.f32.mrf.mxu0  ;;  %v879_v46 = vadd.f32 %v878_v17, %v877_v15 }
  0xf4   :  { %v880_v19 = vpop.f32.mrf.mxu1  ;;  %v561_v45 = vadd.f32 %v845_v33, %v739_v25 }
  0xf5   :  { %v847_v20 = vpop.f32.mrf.mxu0 }
  0xf6   :  { %v881_v21 = vpop.f32.mrf.mxu1  ;;  %v848_v41 = vadd.f32 %v847_v20, %v846_v18  ;;  %v618_v59 = vadd.f32 %v879_v46, %v561_v45 }
  0xf7   :  { %v849_v22 = vpop.f32.mrf.mxu0  ;;  %v882_v55 = vadd.f32 %v881_v21, %v880_v19 }
  0xf8   :  { %v883_v24 = vpop.f32.mrf.mxu1  ;;  %v566_v54 = vadd.f32 %v848_v41, %v739_v25 }
  0xf9   :  { %v850_v28 = vpop.f32.mrf.mxu0 }
  0xfa   :  { %v884_v30 = vpop.f32.mrf.mxu1  ;;  %v851_v60 = vadd.f32 %v850_v28, %v849_v22  ;;  %v623_v4 = vadd.f32 %v882_v55, %v566_v54 }
  0xfb   :  { %v885_v8 = vadd.f32 %v884_v30, %v883_v24 }
  0xfc   :  { %v569_v7 = vadd.f32 %v851_v60, %v739_v25 }
  0xfe   :  { %v626_v16 = vadd.f32 %v885_v8, %v569_v7 }
 0x103   :  { %v902_v34 = vpop.f32.mrf.mxu0 }
 0x104   :  { %v908_v36 = vpop.f32.mrf.mxu1 }
 0x105   :  { %v903_v38 = vpop.f32.mrf.mxu0 }
 0x106   :  { %v904_v42 = vadd.f32 %v903_v38, %v902_v34  ;;  %v909_v43 = vpop.f32.mrf.mxu1 }
 0x107   :  { %v910_v47 = vadd.f32 %v909_v43, %v908_v36  ;;  %v905_v48 = vpop.f32.mrf.mxu0 }
 0x108   :  { %v664_v49 = vadd.f32 %v904_v42, %v607_v39  ;;  %v911_v50 = vpop.f32.mrf.mxu1 }
 0x109   :  { %v672_v52 = vadd.f32 %v910_v47, %v615_v44  ;;  %v906_v53 = vpop.f32.mrf.mxu0 }
 0x10a   :  { %v686_v56 = vmax.f32 %v664_v49, 0.0  ;;  %v907_v57 = vadd.f32 %v906_v53, %v905_v48  ;;  %v912_v58 = vpop.f32.mrf.mxu1 }
 0x10b   :  { %v688_v61 = vmax.f32 %v672_v52, 0.0  ;;  %v913_v62 = vadd.f32 %v912_v58, %v911_v50 }
 0x10c   :  { %v812_v63 = vpack.c.bf16 %v686_v56, %v686_v56  ;;  %v667_v0 = vadd.f32 %v907_v57, %v610_v51  ;;  %v914_v1 = vpop.f32.mrf.mxu1 }
 0x10d   :  { %v814_v2 = vpack.c.bf16 %v688_v61, %v688_v61  ;;  %v675_v3 = vadd.f32 %v913_v62, %v618_v59 }
 0x10e   :  { %717 = vst.msk [vmem:[#allocation2] sm:$0xf] %vm716_vm0, %v812_v63  ;;  %v687_v5 = vmax.f32 %v667_v0, 0.0  ;;  %v915_v6 = vpop.f32.mrf.mxu1 }
 0x10f   :  { %719 = vst.msk [vmem:[#allocation2 + $0x8] sm:$0xf] %vm716_vm0, %v814_v2  ;;  %v689_v9 = vmax.f32 %v675_v3, 0.0  ;;  %v916_v10 = vadd.f32 %v915_v6, %v914_v1 }
 0x110   :  { %v813_v11 = vpack.c.bf16 %v687_v5, %v687_v5  ;;  %v917_v12 = vpop.f32.mrf.mxu1 }
 0x111   :  { %v815_v13 = vpack.c.bf16 %v689_v9, %v689_v9  ;;  %v680_v14 = vadd.f32 %v916_v10, %v623_v4 }
 0x112   :  { %718 = vst.msk [vmem:[#allocation2 + $0x4] sm:$0xf] %vm716_vm0, %v813_v11  ;;  %v918_v15 = vpop.f32.mrf.mxu1 }
 0x113   :  { %720 = vst.msk [vmem:[#allocation2 + $0xc] sm:$0xf] %vm716_vm0, %v815_v13  ;;  %v690_v17 = vmax.f32 %v680_v14, 0.0  ;;  %v919_v18 = vadd.f32 %v918_v15, %v917_v12 }
 0x115   :  { %v816_v19 = vpack.c.bf16 %v690_v17, %v690_v17  ;;  %v683_v20 = vadd.f32 %v919_v18, %v626_v16 }
 0x117   :  { %721 = vst.msk [vmem:[#allocation2 + $0x10] sm:$0xf] %vm716_vm0, %v816_v19  ;;  %v691_v21 = vmax.f32 %v683_v20, 0.0 }
 0x119   :  { %v817_v22 = vpack.c.bf16 %v691_v21, %v691_v21 }
 0x11b   :  { %722 = vst.msk [vmem:[#allocation2 + $0x14] sm:$0xf] %vm716_vm0, %v817_v22 }
 0x11c   :  { %1025 = shalt.err (!%p1022_p4)
}
 0x11d   :  { %s1037_s11 = smov 64   ;;  %s1038_s12 = smov 4  }
 0x11e   :  { %734 = dma.vmem_to_hbm [thread:$0]  %s729_s9, 384, %s1272_s3, [#allocation3], %s1037_s11, %s1037_s11, %s1038_s12  }
 0x11f   :  { %1034 = dma.done.wait [#allocation3], 384  }
 0x120   :  { %1035 = vsyncadd [#allocation3], 4294966912 }
 0x121   :  { %738 = vsyncpa [#allocation3], 1 }

</bundles_post_ra>
